<compile_context>
chip_gen: v7x
topology: tpu7x:2x2x1
jax: 0.10.0
libtpu: 0.0.40
codegen_flags: <defaults>
</compile_context>

<pallas_src>
import numpy as np
import jax
import jax.numpy as jnp
from jax.experimental import pallas as pl
from jax.experimental.pallas import tpu as pltpu

# ---- problem sizes (small, consistent with the module) ----
N, C_IN, C_OUT = 2, 4, 16
L = 32
K = 16
PAD = 7
RED = 8
C_HID = C_OUT // RED
L1 = L + 2 * PAD - K + 1      # 31  (after conv1)
L2 = L1 + 2 * PAD - K + 1     # 30  (after conv2)
EPS = 1e-5

# ---- lane-dense layout constants ----
COLS = 128                    # lane-dense column count for all (C, columns) slabs
COL1 = L1 * N                 # 62 valid conv1 columns, ordered (l1, n)
COL2 = L2 * N                 # 60 valid conv2/output columns, ordered (l2, n)
APAD_COLS = 256               # conv2-padded activation scratch width (>= 14+128 and 30+128)

# data slab rows (sublane-aligned segments)
ROW_UNF1 = 0                  # 64 rows: im2col of x
ROW_XS = C_IN * K             # 64..67: interpolated skip input
ROW_FC1 = 72                  # 72..73: SE fc1 weight (2, 16)
DROWS = 80

# weight slab column offsets
OFF_W2 = 0                    # (16, 256)
OFF_W1 = OFF_W2 + K * C_OUT   # 256, (16, 64)
OFF_WSK = OFF_W1 + C_IN * K   # 320, (16, 4)
OFF_FC2 = OFF_WSK + C_IN      # 324, (16, 2)
OFF_G1 = OFF_FC2 + C_HID      # 326
OFF_BE1 = OFF_G1 + 1          # 327
OFF_G2 = OFF_BE1 + 1          # 328
OFF_BE2 = OFF_G2 + 1          # 329
OFF_BSK = OFF_BE2 + 1         # 330
WCOLS = 384


def residual_block_kernel(data_ref, w_ref, o_ref, a1pad_ref, unf2_ref):
    f32 = jnp.float32

    # ---- static views of the two packed input slabs ----
    unf1 = data_ref[pl.ds(ROW_UNF1, C_IN * K), :]                 # (64, 128)
    xs = data_ref[pl.ds(ROW_XS, C_IN), :]                         # (4, 128)
    wfc1 = data_ref[pl.ds(ROW_FC1, C_HID), pl.ds(0, C_OUT)]       # (2, 16)

    w2f = w_ref[:, pl.ds(OFF_W2, K * C_OUT)]                      # (16, 256)
    w1f = w_ref[:, pl.ds(OFF_W1, C_IN * K)]                       # (16, 64)
    wsk = w_ref[:, pl.ds(OFF_WSK, C_IN)]                          # (16, 4)
    wfc2 = w_ref[:, pl.ds(OFF_FC2, C_HID)]                        # (16, 2)
    g1 = w_ref[:, pl.ds(OFF_G1, 1)]
    be1 = w_ref[:, pl.ds(OFF_BE1, 1)]
    g2 = w_ref[:, pl.ds(OFF_G2, 1)]
    be2 = w_ref[:, pl.ds(OFF_BE2, 1)]
    bsk = w_ref[:, pl.ds(OFF_BSK, 1)]

    col = jax.lax.broadcasted_iota(jnp.int32, (1, COLS), 1)       # lane index
    valid1 = (col < COL1).astype(f32)
    valid2 = (col < COL2).astype(f32)

    # ---- conv1: single im2col matmul (padded columns of unf1 are zero) ----
    h1 = jnp.dot(w1f, unf1, preferred_element_type=f32)           # (16, 128)

    # ---- bn1 (training-mode batch stats) + ReLU, fused scale/shift ----
    inv_m1 = 1.0 / float(N * L1)
    mean1 = jnp.sum(h1, axis=1, keepdims=True) * inv_m1
    var1 = jnp.sum(h1 * h1, axis=1, keepdims=True) * inv_m1 - mean1 * mean1
    scale1 = jax.lax.rsqrt(var1 + EPS) * g1
    shift1 = be1 - mean1 * scale1
    a1 = jnp.maximum(h1 * scale1 + shift1, 0.0) * valid1          # zero padded cols

    # ---- conv2 padding: zeroed scratch + one lane-window store (no pad matmul)
    a1pad_ref[...] = jnp.zeros_like(a1pad_ref)
    a1pad_ref[:, pl.ds(PAD * N, COLS)] = a1

    # ---- conv2 im2col: K sublane-offset stores into scratch, one contraction
    for k in range(K):
        unf2_ref[pl.ds(k * C_OUT, C_OUT), :] = a1pad_ref[:, pl.ds(k * N, COLS)]
    h2 = jnp.dot(w2f, unf2_ref[...], preferred_element_type=f32)  # (16, 128)
    h2 = h2 * valid2          # columns >= L2*N carry window overrun; zero them

    # ---- bn2 (no ReLU yet), fused scale/shift ----
    inv_m2 = 1.0 / float(N * L2)
    mean2 = jnp.sum(h2, axis=1, keepdims=True) * inv_m2
    var2 = jnp.sum(h2 * h2, axis=1, keepdims=True) * inv_m2 - mean2 * mean2
    scale2 = jax.lax.rsqrt(var2 + EPS) * g2
    shift2 = be2 - mean2 * scale2
    bn2 = h2 * scale2 + shift2                                    # (16, 128)

    # ---- SE: masked per-batch length averages, two FCs, parity-select gate ----
    par = col % N
    m0 = jnp.logical_and(par == 0, col < COL2).astype(f32)
    m1 = jnp.logical_and(par == 1, col < COL2).astype(f32)
    inv_l2 = 1.0 / float(L2)
    y0 = jnp.sum(bn2 * m0, axis=1, keepdims=True) * inv_l2        # (16, 1) batch 0
    y1 = jnp.sum(bn2 * m1, axis=1, keepdims=True) * inv_l2        # (16, 1) batch 1
    y = jnp.concatenate([y0, y1], axis=1)                         # (16, 2)
    z = jnp.maximum(jnp.dot(wfc1, y, preferred_element_type=f32), 0.0)   # (2, 2)
    g = jax.nn.sigmoid(jnp.dot(wfc2, z, preferred_element_type=f32))     # (16, 2)
    gate = jnp.where(par == 0, g[:, 0:1], g[:, 1:2])              # (16, 128)

    # ---- skip branch: 1x1 conv on interpolated input (padded cols of xs are 0)
    res = jnp.dot(wsk, xs, preferred_element_type=f32) + bsk      # (16, 128)

    # ---- gate * bn2 + skip, final ReLU, single lane-dense 128-wide store ----
    o_ref[...] = jnp.maximum(bn2 * gate + res, 0.0)


@jax.jit
def residual_block(x, params):
    (w1, b1, g1, be1, w2, b2, g2, be2, wsk, bsk, wfc1, wfc2) = params
    del b1, b2  # exact under training-mode BN: per-channel bias cancels in (h - mean)

    x = x.astype(jnp.float32)

    # --- conv1 im2col (cols ordered (l1, n)), lane-padded to 128 ---
    xpad = jnp.pad(x, ((0, 0), (0, 0), (PAD, PAD)))                          # (N, C_IN, L+2P)
    patches = jnp.stack([xpad[:, :, k:k + L1] for k in range(K)], axis=2)    # (N, C_IN, K, L1)
    unf1 = patches.transpose(1, 2, 3, 0).reshape(C_IN * K, COL1)             # (64, 62)
    unf1 = jnp.pad(unf1, ((0, 0), (0, COLS - COL1)))                         # (64, 128)

    # --- nearest-interpolated skip input (gather), cols (l2, n), lane-padded ---
    idx = (np.arange(L2) * (L / L2)).astype(np.int32)   # floor, like F.interpolate nearest
    xs = x[:, :, idx].transpose(1, 2, 0).reshape(C_IN, COL2)                 # (4, 60)
    xs = jnp.pad(xs, ((0, 0), (0, COLS - COL2)))                             # (4, 128)

    # --- packed data slab (one DMA): unf1 + xs + SE fc1 weight ---
    wfc1p = jnp.pad(wfc1.astype(jnp.float32), ((0, 0), (0, COLS - C_OUT)))   # (2, 128)
    data = jnp.zeros((DROWS, COLS), jnp.float32)
    data = data.at[ROW_UNF1:ROW_UNF1 + C_IN * K].set(unf1)
    data = data.at[ROW_XS:ROW_XS + C_IN].set(xs)
    data = data.at[ROW_FC1:ROW_FC1 + C_HID].set(wfc1p)

    # --- packed weight slab (one DMA): conv/skip/SE weights + BN affine + skip bias ---
    w1flat = w1.reshape(C_OUT, C_IN * K)                                     # col = c*K + k
    w2flat = w2.transpose(0, 2, 1).reshape(C_OUT, K * C_OUT)                 # col = k*C_OUT + c
    wslab = jnp.concatenate(
        [w2flat, w1flat, wsk, wfc2,
         g1[:, None], be1[:, None], g2[:, None], be2[:, None], bsk[:, None]],
        axis=1).astype(jnp.float32)                                          # (16, 331)
    wslab = jnp.pad(wslab, ((0, 0), (0, WCOLS - wslab.shape[1])))            # (16, 384)

    out2d = pl.pallas_call(
        residual_block_kernel,
        out_shape=jax.ShapeDtypeStruct((C_OUT, COLS), jnp.float32),
        in_specs=[pl.BlockSpec(memory_space=pltpu.MemorySpace.VMEM),
                  pl.BlockSpec(memory_space=pltpu.MemorySpace.VMEM)],
        out_specs=pl.BlockSpec(memory_space=pltpu.MemorySpace.VMEM),
        scratch_shapes=[pltpu.VMEM((C_OUT, APAD_COLS), jnp.float32),     # conv2-padded act
                        pltpu.VMEM((K * C_OUT, COLS), jnp.float32)],     # conv2 im2col slab
    )(data, wslab)

    # valid columns are (l2, n) -> back to (N, C_OUT, L2)
    return out2d[:, :COL2].reshape(C_OUT, L2, N).transpose(2, 0, 1)


def reference(x, params):
    """Pure-JAX reference mirroring the PyTorch forward (training-mode BN)."""
    w1, b1, g1, be1, w2, b2, g2, be2, wsk, bsk, wfc1, wfc2 = params

    def conv1d(xx, w, b, pad):
        xxp = jnp.pad(xx, ((0, 0), (0, 0), (pad, pad)))
        lout = xxp.shape[2] - w.shape[2] + 1
        out = jnp.zeros((xx.shape[0], w.shape[0], lout), jnp.float32)
        for k in range(w.shape[2]):
            out = out + jnp.einsum('oc,ncl->nol', w[:, :, k], xxp[:, :, k:k + lout])
        return out + b[None, :, None]

    def bn(h, g, be):
        m = h.mean(axis=(0, 2), keepdims=True)
        v = ((h - m) ** 2).mean(axis=(0, 2), keepdims=True)
        return (h - m) / jnp.sqrt(v + EPS) * g[None, :, None] + be[None, :, None]

    h = jax.nn.relu(bn(conv1d(x, w1, b1, PAD), g1, be1))
    h = bn(conv1d(h, w2, b2, PAD), g2, be2)

    res = jnp.einsum('oc,ncl->nol', wsk, x) + bsk[None, :, None]
    idx = np.floor(np.arange(L2) * (L / L2)).astype(np.int32)
    res = res[:, :, idx]

    y = h.mean(axis=2)                              # (N, C_OUT)
    y = jax.nn.sigmoid(jax.nn.relu(y @ wfc1.T) @ wfc2.T)
    return jax.nn.relu(h * y[:, :, None] + res)


def init_params(key):
    ks = jax.random.split(key, 8)
    w1 = 0.1 * jax.random.normal(ks[0], (C_OUT, C_IN, K), jnp.float32)
    b1 = 0.1 * jax.random.normal(ks[1], (C_OUT,), jnp.float32)
    w2 = 0.1 * jax.random.normal(ks[2], (C_OUT, C_OUT, K), jnp.float32)
    b2 = 0.1 * jax.random.normal(ks[3], (C_OUT,), jnp.float32)
    wsk = 0.1 * jax.random.normal(ks[4], (C_OUT, C_IN), jnp.float32)    # 1x1 conv
    bsk = 0.1 * jax.random.normal(ks[5], (C_OUT,), jnp.float32)
    wfc1 = 0.1 * jax.random.normal(ks[6], (C_HID, C_OUT), jnp.float32)  # Linear, no bias
    wfc2 = 0.1 * jax.random.normal(ks[7], (C_OUT, C_HID), jnp.float32)  # Linear, no bias
    g1 = jnp.ones((C_OUT,), jnp.float32); be1 = jnp.zeros((C_OUT,), jnp.float32)
    g2 = jnp.ones((C_OUT,), jnp.float32); be2 = jnp.zeros((C_OUT,), jnp.float32)
    return (w1, b1, g1, be1, w2, b2, g2, be2, wsk, bsk, wfc1, wfc2)


if __name__ == "__main__":
    key = jax.random.PRNGKey(0)
    kx, kp = jax.random.split(key)
    x = jax.random.normal(kx, (N, C_IN, L), jnp.float32)
    params = init_params(kp)

    out = jax.block_until_ready(residual_block(x, params))
    ref = jax.block_until_ready(reference(x, params))

    assert out.shape == (N, C_OUT, L2)
    assert np.all(np.isfinite(np.asarray(out)))
    np.testing.assert_allclose(np.asarray(out), np.asarray(ref), rtol=1e-3, atol=1e-3)
    print("KERNEL_OK")
</pallas_src>

<mosaic_0001>
module attributes {stable_mosaic.version = 11 : i64} {
  func.func @residual_block_kernel(%arg0: memref<80x128xf32, #tpu.memory_space<vmem>>, %arg1: memref<16x384xf32, #tpu.memory_space<vmem>>, %arg2: memref<16x128xf32, #tpu.memory_space<vmem>>, %arg3: memref<16x256xf32, #tpu.memory_space<vmem>>, %arg4: memref<256x128xf32, #tpu.memory_space<vmem>>) attributes {dimension_semantics = [], scalar_prefetch = 0 : i64, scratch_operands = 2 : i64, tpu.core_type = #tpu.core_type<tc>} {
    %c0 = arith.constant 0 : index
    %c0_0 = arith.constant 0 : index
    %0 = vector.load %arg0[%c0, %c0_0] : memref<80x128xf32, #tpu.memory_space<vmem>>, vector<64x128xf32>
    %c64 = arith.constant 64 : index
    %c0_1 = arith.constant 0 : index
    %1 = vector.load %arg0[%c64, %c0_1] : memref<80x128xf32, #tpu.memory_space<vmem>>, vector<4x128xf32>
    %c72 = arith.constant 72 : index
    %c0_2 = arith.constant 0 : index
    %2 = vector.load %arg0[%c72, %c0_2] : memref<80x128xf32, #tpu.memory_space<vmem>>, vector<2x16xf32>
    %c0_3 = arith.constant 0 : index
    %c0_4 = arith.constant 0 : index
    %3 = vector.load %arg1[%c0_3, %c0_4] : memref<16x384xf32, #tpu.memory_space<vmem>>, vector<16x256xf32>
    %c0_5 = arith.constant 0 : index
    %c256 = arith.constant 256 : index
    %4 = vector.load %arg1[%c0_5, %c256] : memref<16x384xf32, #tpu.memory_space<vmem>>, vector<16x64xf32>
    %c0_6 = arith.constant 0 : index
    %c320 = arith.constant 320 : index
    %5 = vector.load %arg1[%c0_6, %c320] : memref<16x384xf32, #tpu.memory_space<vmem>>, vector<16x4xf32>
    %c0_7 = arith.constant 0 : index
    %c324 = arith.constant 324 : index
    %6 = vector.load %arg1[%c0_7, %c324] : memref<16x384xf32, #tpu.memory_space<vmem>>, vector<16x2xf32>
    %c0_8 = arith.constant 0 : index
    %c326 = arith.constant 326 : index
    %7 = vector.load %arg1[%c0_8, %c326] : memref<16x384xf32, #tpu.memory_space<vmem>>, vector<16x1xf32>
    %c0_9 = arith.constant 0 : index
    %c327 = arith.constant 327 : index
    %8 = vector.load %arg1[%c0_9, %c327] : memref<16x384xf32, #tpu.memory_space<vmem>>, vector<16x1xf32>
    %c0_10 = arith.constant 0 : index
    %c328 = arith.constant 328 : index
    %9 = vector.load %arg1[%c0_10, %c328] : memref<16x384xf32, #tpu.memory_space<vmem>>, vector<16x1xf32>
    %c0_11 = arith.constant 0 : index
    %c329 = arith.constant 329 : index
    %10 = vector.load %arg1[%c0_11, %c329] : memref<16x384xf32, #tpu.memory_space<vmem>>, vector<16x1xf32>
    %c0_12 = arith.constant 0 : index
    %c330 = arith.constant 330 : index
    %11 = vector.load %arg1[%c0_12, %c330] : memref<16x384xf32, #tpu.memory_space<vmem>>, vector<16x1xf32>
    %12 = tpu.iota {dimensions = array<i32: 1>} : vector<1x128xi32>
    %c62_i32 = arith.constant 62 : i32
    %13 = vector.broadcast %c62_i32 : i32 to vector<1x128xi32>
    %14 = arith.cmpi slt, %12, %13 : vector<1x128xi32>
    %15 = arith.extui %14 : vector<1x128xi1> to vector<1x128xi32>
    %16 = arith.sitofp %15 : vector<1x128xi32> to vector<1x128xf32>
    %c60_i32 = arith.constant 60 : i32
    %17 = vector.broadcast %c60_i32 : i32 to vector<1x128xi32>
    %18 = arith.cmpi slt, %12, %17 : vector<1x128xi32>
    %19 = arith.extui %18 : vector<1x128xi1> to vector<1x128xi32>
    %20 = arith.sitofp %19 : vector<1x128xi32> to vector<1x128xf32>
    %cst = arith.constant dense<0.000000e+00> : vector<16x128xf32>
    %21 = tpu.matmul %4, %0, %cst {dimension_numbers = #tpu.dot_dimension_numbers<[1], [0], [0], [1], [0, 0, 1, 1], [], []>} : vector<16x64xf32>, vector<64x128xf32>, vector<16x128xf32> -> vector<16x128xf32>
    %cst_13 = arith.constant dense<0.000000e+00> : vector<16xf32>
    %22 = vector.multi_reduction <add>, %21, %cst_13 [1] : vector<16x128xf32> to vector<16xf32>
    %23 = vector.shape_cast %22 : vector<16xf32> to vector<16x1xf32>
    %cst_14 = arith.constant 0.0161290318 : f32
    %24 = vector.broadcast %cst_14 : f32 to vector<16x1xf32>
    %25 = arith.mulf %23, %24 : vector<16x1xf32>
    %26 = arith.mulf %21, %21 : vector<16x128xf32>
    %cst_15 = arith.constant dense<0.000000e+00> : vector<16xf32>
    %27 = vector.multi_reduction <add>, %26, %cst_15 [1] : vector<16x128xf32> to vector<16xf32>
    %28 = vector.shape_cast %27 : vector<16xf32> to vector<16x1xf32>
    %cst_16 = arith.constant 0.0161290318 : f32
    %29 = vector.broadcast %cst_16 : f32 to vector<16x1xf32>
    %30 = arith.mulf %28, %29 : vector<16x1xf32>
    %31 = arith.mulf %25, %25 : vector<16x1xf32>
    %32 = arith.subf %30, %31 : vector<16x1xf32>
    %cst_17 = arith.constant 9.99999974E-6 : f32
    %33 = vector.broadcast %cst_17 : f32 to vector<16x1xf32>
    %34 = arith.addf %32, %33 : vector<16x1xf32>
    %35 = math.rsqrt %34 : vector<16x1xf32>
    %36 = arith.mulf %35, %7 : vector<16x1xf32>
    %37 = arith.mulf %25, %36 : vector<16x1xf32>
    %38 = arith.subf %8, %37 : vector<16x1xf32>
    %39 = vector.broadcast %36 : vector<16x1xf32> to vector<16x128xf32>
    %40 = arith.mulf %21, %39 : vector<16x128xf32>
    %41 = vector.broadcast %38 : vector<16x1xf32> to vector<16x128xf32>
    %42 = arith.addf %40, %41 : vector<16x128xf32>
    %cst_18 = arith.constant 0.000000e+00 : f32
    %43 = vector.broadcast %cst_18 : f32 to vector<16x128xf32>
    %44 = arith.maximumf %42, %43 : vector<16x128xf32>
    %45 = vector.broadcast %16 : vector<1x128xf32> to vector<16x128xf32>
    %46 = arith.mulf %44, %45 : vector<16x128xf32>
    %cst_19 = arith.constant 0.000000e+00 : f32
    %47 = vector.broadcast %cst_19 : f32 to vector<16x256xf32>
    %c0_20 = arith.constant 0 : index
    %c0_21 = arith.constant 0 : index
    %48 = vector.load %arg3[%c0_20, %c0_21] : memref<16x256xf32, #tpu.memory_space<vmem>>, vector<16x256xf32>
    tpu.vector_store %arg3[%c0_20, %c0_21], %47 {strides = array<i32>} : memref<16x256xf32, #tpu.memory_space<vmem>>, vector<16x256xf32>,
    %c0_22 = arith.constant 0 : index
    %c14 = arith.constant 14 : index
    %49 = vector.load %arg3[%c0_22, %c14] : memref<16x256xf32, #tpu.memory_space<vmem>>, vector<16x128xf32>
    tpu.vector_store %arg3[%c0_22, %c14], %46 {strides = array<i32>} : memref<16x256xf32, #tpu.memory_space<vmem>>, vector<16x128xf32>,
    %c0_23 = arith.constant 0 : index
    %c0_24 = arith.constant 0 : index
    %50 = vector.load %arg3[%c0_23, %c0_24] : memref<16x256xf32, #tpu.memory_space<vmem>>, vector<16x128xf32>
    %c0_25 = arith.constant 0 : index
    %c0_26 = arith.constant 0 : index
    %51 = vector.load %arg4[%c0_25, %c0_26] : memref<256x128xf32, #tpu.memory_space<vmem>>, vector<16x128xf32>
    tpu.vector_store %arg4[%c0_25, %c0_26], %50 {strides = array<i32>} : memref<256x128xf32, #tpu.memory_space<vmem>>, vector<16x128xf32>,
    %c0_27 = arith.constant 0 : index
    %c2 = arith.constant 2 : index
    %52 = vector.load %arg3[%c0_27, %c2] : memref<16x256xf32, #tpu.memory_space<vmem>>, vector<16x128xf32>
    %c16 = arith.constant 16 : index
    %c0_28 = arith.constant 0 : index
    %53 = vector.load %arg4[%c16, %c0_28] : memref<256x128xf32, #tpu.memory_space<vmem>>, vector<16x128xf32>
    tpu.vector_store %arg4[%c16, %c0_28], %52 {strides = array<i32>} : memref<256x128xf32, #tpu.memory_space<vmem>>, vector<16x128xf32>,
    %c0_29 = arith.constant 0 : index
    %c4 = arith.constant 4 : index
    %54 = vector.load %arg3[%c0_29, %c4] : memref<16x256xf32, #tpu.memory_space<vmem>>, vector<16x128xf32>
    %c32 = arith.constant 32 : index
    %c0_30 = arith.constant 0 : index
    %55 = vector.load %arg4[%c32, %c0_30] : memref<256x128xf32, #tpu.memory_space<vmem>>, vector<16x128xf32>
    tpu.vector_store %arg4[%c32, %c0_30], %54 {strides = array<i32>} : memref<256x128xf32, #tpu.memory_space<vmem>>, vector<16x128xf32>,
    %c0_31 = arith.constant 0 : index
    %c6 = arith.constant 6 : index
    %56 = vector.load %arg3[%c0_31, %c6] : memref<16x256xf32, #tpu.memory_space<vmem>>, vector<16x128xf32>
    %c48 = arith.constant 48 : index
    %c0_32 = arith.constant 0 : index
    %57 = vector.load %arg4[%c48, %c0_32] : memref<256x128xf32, #tpu.memory_space<vmem>>, vector<16x128xf32>
    tpu.vector_store %arg4[%c48, %c0_32], %56 {strides = array<i32>} : memref<256x128xf32, #tpu.memory_space<vmem>>, vector<16x128xf32>,
    %c0_33 = arith.constant 0 : index
    %c8 = arith.constant 8 : index
    %58 = vector.load %arg3[%c0_33, %c8] : memref<16x256xf32, #tpu.memory_space<vmem>>, vector<16x128xf32>
    %c64_34 = arith.constant 64 : index
    %c0_35 = arith.constant 0 : index
    %59 = vector.load %arg4[%c64_34, %c0_35] : memref<256x128xf32, #tpu.memory_space<vmem>>, vector<16x128xf32>
    tpu.vector_store %arg4[%c64_34, %c0_35], %58 {strides = array<i32>} : memref<256x128xf32, #tpu.memory_space<vmem>>, vector<16x128xf32>,
    %c0_36 = arith.constant 0 : index
    %c10 = arith.constant 10 : index
    %60 = vector.load %arg3[%c0_36, %c10] : memref<16x256xf32, #tpu.memory_space<vmem>>, vector<16x128xf32>
    %c80 = arith.constant 80 : index
    %c0_37 = arith.constant 0 : index
    %61 = vector.load %arg4[%c80, %c0_37] : memref<256x128xf32, #tpu.memory_space<vmem>>, vector<16x128xf32>
    tpu.vector_store %arg4[%c80, %c0_37], %60 {strides = array<i32>} : memref<256x128xf32, #tpu.memory_space<vmem>>, vector<16x128xf32>,
    %c0_38 = arith.constant 0 : index
    %c12 = arith.constant 12 : index
    %62 = vector.load %arg3[%c0_38, %c12] : memref<16x256xf32, #tpu.memory_space<vmem>>, vector<16x128xf32>
    %c96 = arith.constant 96 : index
    %c0_39 = arith.constant 0 : index
    %63 = vector.load %arg4[%c96, %c0_39] : memref<256x128xf32, #tpu.memory_space<vmem>>, vector<16x128xf32>
    tpu.vector_store %arg4[%c96, %c0_39], %62 {strides = array<i32>} : memref<256x128xf32, #tpu.memory_space<vmem>>, vector<16x128xf32>,
    %c0_40 = arith.constant 0 : index
    %c14_41 = arith.constant 14 : index
    %64 = vector.load %arg3[%c0_40, %c14_41] : memref<16x256xf32, #tpu.memory_space<vmem>>, vector<16x128xf32>
    %c112 = arith.constant 112 : index
    %c0_42 = arith.constant 0 : index
    %65 = vector.load %arg4[%c112, %c0_42] : memref<256x128xf32, #tpu.memory_space<vmem>>, vector<16x128xf32>
    tpu.vector_store %arg4[%c112, %c0_42], %64 {strides = array<i32>} : memref<256x128xf32, #tpu.memory_space<vmem>>, vector<16x128xf32>,
    %c0_43 = arith.constant 0 : index
    %c16_44 = arith.constant 16 : index
    %66 = vector.load %arg3[%c0_43, %c16_44] : memref<16x256xf32, #tpu.memory_space<vmem>>, vector<16x128xf32>
    %c128 = arith.constant 128 : index
    %c0_45 = arith.constant 0 : index
    %67 = vector.load %arg4[%c128, %c0_45] : memref<256x128xf32, #tpu.memory_space<vmem>>, vector<16x128xf32>
    tpu.vector_store %arg4[%c128, %c0_45], %66 {strides = array<i32>} : memref<256x128xf32, #tpu.memory_space<vmem>>, vector<16x128xf32>,
    %c0_46 = arith.constant 0 : index
    %c18 = arith.constant 18 : index
    %68 = vector.load %arg3[%c0_46, %c18] : memref<16x256xf32, #tpu.memory_space<vmem>>, vector<16x128xf32>
    %c144 = arith.constant 144 : index
    %c0_47 = arith.constant 0 : index
    %69 = vector.load %arg4[%c144, %c0_47] : memref<256x128xf32, #tpu.memory_space<vmem>>, vector<16x128xf32>
    tpu.vector_store %arg4[%c144, %c0_47], %68 {strides = array<i32>} : memref<256x128xf32, #tpu.memory_space<vmem>>, vector<16x128xf32>,
    %c0_48 = arith.constant 0 : index
    %c20 = arith.constant 20 : index
    %70 = vector.load %arg3[%c0_48, %c20] : memref<16x256xf32, #tpu.memory_space<vmem>>, vector<16x128xf32>
    %c160 = arith.constant 160 : index
    %c0_49 = arith.constant 0 : index
    %71 = vector.load %arg4[%c160, %c0_49] : memref<256x128xf32, #tpu.memory_space<vmem>>, vector<16x128xf32>
    tpu.vector_store %arg4[%c160, %c0_49], %70 {strides = array<i32>} : memref<256x128xf32, #tpu.memory_space<vmem>>, vector<16x128xf32>,
    %c0_50 = arith.constant 0 : index
    %c22 = arith.constant 22 : index
    %72 = vector.load %arg3[%c0_50, %c22] : memref<16x256xf32, #tpu.memory_space<vmem>>, vector<16x128xf32>
    %c176 = arith.constant 176 : index
    %c0_51 = arith.constant 0 : index
    %73 = vector.load %arg4[%c176, %c0_51] : memref<256x128xf32, #tpu.memory_space<vmem>>, vector<16x128xf32>
    tpu.vector_store %arg4[%c176, %c0_51], %72 {strides = array<i32>} : memref<256x128xf32, #tpu.memory_space<vmem>>, vector<16x128xf32>,
    %c0_52 = arith.constant 0 : index
    %c24 = arith.constant 24 : index
    %74 = vector.load %arg3[%c0_52, %c24] : memref<16x256xf32, #tpu.memory_space<vmem>>, vector<16x128xf32>
    %c192 = arith.constant 192 : index
    %c0_53 = arith.constant 0 : index
    %75 = vector.load %arg4[%c192, %c0_53] : memref<256x128xf32, #tpu.memory_space<vmem>>, vector<16x128xf32>
    tpu.vector_store %arg4[%c192, %c0_53], %74 {strides = array<i32>} : memref<256x128xf32, #tpu.memory_space<vmem>>, vector<16x128xf32>,
    %c0_54 = arith.constant 0 : index
    %c26 = arith.constant 26 : index
    %76 = vector.load %arg3[%c0_54, %c26] : memref<16x256xf32, #tpu.memory_space<vmem>>, vector<16x128xf32>
    %c208 = arith.constant 208 : index
    %c0_55 = arith.constant 0 : index
    %77 = vector.load %arg4[%c208, %c0_55] : memref<256x128xf32, #tpu.memory_space<vmem>>, vector<16x128xf32>
    tpu.vector_store %arg4[%c208, %c0_55], %76 {strides = array<i32>} : memref<256x128xf32, #tpu.memory_space<vmem>>, vector<16x128xf32>,
    %c0_56 = arith.constant 0 : index
    %c28 = arith.constant 28 : index
    %78 = vector.load %arg3[%c0_56, %c28] : memref<16x256xf32, #tpu.memory_space<vmem>>, vector<16x128xf32>
    %c224 = arith.constant 224 : index
    %c0_57 = arith.constant 0 : index
    %79 = vector.load %arg4[%c224, %c0_57] : memref<256x128xf32, #tpu.memory_space<vmem>>, vector<16x128xf32>
    tpu.vector_store %arg4[%c224, %c0_57], %78 {strides = array<i32>} : memref<256x128xf32, #tpu.memory_space<vmem>>, vector<16x128xf32>,
    %c0_58 = arith.constant 0 : index
    %c30 = arith.constant 30 : index
    %80 = vector.load %arg3[%c0_58, %c30] : memref<16x256xf32, #tpu.memory_space<vmem>>, vector<16x128xf32>
    %c240 = arith.constant 240 : index
    %c0_59 = arith.constant 0 : index
    %81 = vector.load %arg4[%c240, %c0_59] : memref<256x128xf32, #tpu.memory_space<vmem>>, vector<16x128xf32>
    tpu.vector_store %arg4[%c240, %c0_59], %80 {strides = array<i32>} : memref<256x128xf32, #tpu.memory_space<vmem>>, vector<16x128xf32>,
    %c0_60 = arith.constant 0 : index
    %c0_61 = arith.constant 0 : index
    %82 = vector.load %arg4[%c0_60, %c0_61] : memref<256x128xf32, #tpu.memory_space<vmem>>, vector<256x128xf32>
    %cst_62 = arith.constant dense<0.000000e+00> : vector<16x128xf32>
    %83 = tpu.matmul %3, %82, %cst_62 {dimension_numbers = #tpu.dot_dimension_numbers<[1], [0], [0], [1], [0, 0, 1, 1], [], []>} : vector<16x256xf32>, vector<256x128xf32>, vector<16x128xf32> -> vector<16x128xf32>
    %84 = vector.broadcast %20 : vector<1x128xf32> to vector<16x128xf32>
    %85 = arith.mulf %83, %84 : vector<16x128xf32>
    %cst_63 = arith.constant dense<0.000000e+00> : vector<16xf32>
    %86 = vector.multi_reduction <add>, %85, %cst_63 [1] : vector<16x128xf32> to vector<16xf32>
    %87 = vector.shape_cast %86 : vector<16xf32> to vector<16x1xf32>
    %cst_64 = arith.constant 0.0166666675 : f32
    %88 = vector.broadcast %cst_64 : f32 to vector<16x1xf32>
    %89 = arith.mulf %87, %88 : vector<16x1xf32>
    %90 = arith.mulf %85, %85 : vector<16x128xf32>
    %cst_65 = arith.constant dense<0.000000e+00> : vector<16xf32>
    %91 = vector.multi_reduction <add>, %90, %cst_65 [1] : vector<16x128xf32> to vector<16xf32>
    %92 = vector.shape_cast %91 : vector<16xf32> to vector<16x1xf32>
    %cst_66 = arith.constant 0.0166666675 : f32
    %93 = vector.broadcast %cst_66 : f32 to vector<16x1xf32>
    %94 = arith.mulf %92, %93 : vector<16x1xf32>
    %95 = arith.mulf %89, %89 : vector<16x1xf32>
    %96 = arith.subf %94, %95 : vector<16x1xf32>
    %cst_67 = arith.constant 9.99999974E-6 : f32
    %97 = vector.broadcast %cst_67 : f32 to vector<16x1xf32>
    %98 = arith.addf %96, %97 : vector<16x1xf32>
    %99 = math.rsqrt %98 : vector<16x1xf32>
    %100 = arith.mulf %99, %9 : vector<16x1xf32>
    %101 = arith.mulf %89, %100 : vector<16x1xf32>
    %102 = arith.subf %10, %101 : vector<16x1xf32>
    %103 = vector.broadcast %100 : vector<16x1xf32> to vector<16x128xf32>
    %104 = arith.mulf %85, %103 : vector<16x128xf32>
    %105 = vector.broadcast %102 : vector<16x1xf32> to vector<16x128xf32>
    %106 = arith.addf %104, %105 : vector<16x128xf32>
    %c2_i32 = arith.constant 2 : i32
    %c0_i32 = arith.constant 0 : i32
    %107 = arith.cmpi eq, %c2_i32, %c0_i32 : i32
    %c1_i32 = arith.constant 1 : i32
    %108 = arith.select %107, %c1_i32, %c2_i32 : i32
    %109 = vector.broadcast %108 : i32 to vector<1x128xi32>
    %110 = arith.remsi %12, %109 : vector<1x128xi32>
    %c0_i32_68 = arith.constant 0 : i32
    %111 = vector.broadcast %c0_i32_68 : i32 to vector<1x128xi32>
    %112 = arith.cmpi ne, %110, %111 : vector<1x128xi32>
    %c0_i32_69 = arith.constant 0 : i32
    %113 = vector.broadcast %c0_i32_69 : i32 to vector<1x128xi32>
    %114 = arith.cmpi slt, %110, %113 : vector<1x128xi32>
    %c0_i32_70 = arith.constant 0 : i32
    %115 = arith.cmpi slt, %108, %c0_i32_70 : i32
    %116 = vector.broadcast %115 : i1 to vector<1x128xi1>
    %117 = vector.broadcast %116 : vector<1x128xi1> to vector<1x128xi1>
    %118 = arith.xori %114, %117 : vector<1x128xi1>
    %119 = arith.andi %118, %112 : vector<1x128xi1>
    %120 = vector.broadcast %108 : i32 to vector<1x128xi32>
    %121 = arith.addi %110, %120 : vector<1x128xi32>
    %122 = arith.select %119, %121, %110 : vector<1x128xi1>, vector<1x128xi32>
    %c0_i32_71 = arith.constant 0 : i32
    %123 = vector.broadcast %c0_i32_71 : i32 to vector<1x128xi32>
    %124 = arith.cmpi eq, %122, %123 : vector<1x128xi32>
    %c60_i32_72 = arith.constant 60 : i32
    %125 = vector.broadcast %c60_i32_72 : i32 to vector<1x128xi32>
    %126 = arith.cmpi slt, %12, %125 : vector<1x128xi32>
    %127 = arith.andi %124, %126 : vector<1x128xi1>
    %128 = arith.extui %127 : vector<1x128xi1> to vector<1x128xi32>
    %129 = arith.sitofp %128 : vector<1x128xi32> to vector<1x128xf32>
    %c1_i32_73 = arith.constant 1 : i32
    %130 = vector.broadcast %c1_i32_73 : i32 to vector<1x128xi32>
    %131 = arith.cmpi eq, %122, %130 : vector<1x128xi32>
    %c60_i32_74 = arith.constant 60 : i32
    %132 = vector.broadcast %c60_i32_74 : i32 to vector<1x128xi32>
    %133 = arith.cmpi slt, %12, %132 : vector<1x128xi32>
    %134 = arith.andi %131, %133 : vector<1x128xi1>
    %135 = arith.extui %134 : vector<1x128xi1> to vector<1x128xi32>
    %136 = arith.sitofp %135 : vector<1x128xi32> to vector<1x128xf32>
    %137 = vector.broadcast %129 : vector<1x128xf32> to vector<16x128xf32>
    %138 = arith.mulf %106, %137 : vector<16x128xf32>
    %cst_75 = arith.constant dense<0.000000e+00> : vector<16xf32>
    %139 = vector.multi_reduction <add>, %138, %cst_75 [1] : vector<16x128xf32> to vector<16xf32>
    %140 = vector.shape_cast %139 : vector<16xf32> to vector<16x1xf32>
    %cst_76 = arith.constant 0.0333333351 : f32
    %141 = vector.broadcast %cst_76 : f32 to vector<16x1xf32>
    %142 = arith.mulf %140, %141 : vector<16x1xf32>
    %143 = vector.broadcast %136 : vector<1x128xf32> to vector<16x128xf32>
    %144 = arith.mulf %106, %143 : vector<16x128xf32>
    %cst_77 = arith.constant dense<0.000000e+00> : vector<16xf32>
    %145 = vector.multi_reduction <add>, %144, %cst_77 [1] : vector<16x128xf32> to vector<16xf32>
    %146 = vector.shape_cast %145 : vector<16xf32> to vector<16x1xf32>
    %cst_78 = arith.constant 0.0333333351 : f32
    %147 = vector.broadcast %cst_78 : f32 to vector<16x1xf32>
    %148 = arith.mulf %146, %147 : vector<16x1xf32>
    %149 = tpu.concatenate %142, %148 in 1 : vector<16x1xf32>, vector<16x1xf32> -> vector<16x2xf32>
    %cst_79 = arith.constant dense<0.000000e+00> : vector<2x2xf32>
    %150 = tpu.matmul %2, %149, %cst_79 {dimension_numbers = #tpu.dot_dimension_numbers<[1], [0], [0], [1], [0, 0, 1, 1], [], []>} : vector<2x16xf32>, vector<16x2xf32>, vector<2x2xf32> -> vector<2x2xf32>
    %cst_80 = arith.constant 0.000000e+00 : f32
    %151 = vector.broadcast %cst_80 : f32 to vector<2x2xf32>
    %152 = arith.maximumf %150, %151 : vector<2x2xf32>
    %cst_81 = arith.constant dense<0.000000e+00> : vector<16x2xf32>
    %153 = tpu.matmul %6, %152, %cst_81 {dimension_numbers = #tpu.dot_dimension_numbers<[1], [0], [0], [1], [0, 0, 1, 1], [], []>} : vector<16x2xf32>, vector<2x2xf32>, vector<16x2xf32> -> vector<16x2xf32>
    %154 = arith.negf %153 : vector<16x2xf32>
    %155 = math.exp %154 : vector<16x2xf32>
    %cst_82 = arith.constant 1.000000e+00 : f32
    %156 = vector.broadcast %cst_82 : f32 to vector<16x2xf32>
    %157 = arith.addf %156, %155 : vector<16x2xf32>
    %158 = arith.divf %156, %157 : vector<16x2xf32>
    %c0_i32_83 = arith.constant 0 : i32
    %159 = vector.broadcast %c0_i32_83 : i32 to vector<1x128xi32>
    %160 = arith.cmpi eq, %122, %159 : vector<1x128xi32>
    %161 = vector.extract_strided_slice %158 {offsets = [0, 0], sizes = [16, 1], strides = [1, 1]} : vector<16x2xf32> to vector<16x1xf32>
    %162 = vector.extract_strided_slice %158 {offsets = [0, 1], sizes = [16, 1], strides = [1, 1]} : vector<16x2xf32> to vector<16x1xf32>
    %163 = vector.shape_cast %160 : vector<1x128xi1> to vector<1x128xi1>
    %164 = vector.broadcast %163 : vector<1x128xi1> to vector<16x128xi1>
    %165 = vector.shape_cast %161 : vector<16x1xf32> to vector<16x1xf32>
    %166 = vector.broadcast %165 : vector<16x1xf32> to vector<16x128xf32>
    %167 = vector.shape_cast %162 : vector<16x1xf32> to vector<16x1xf32>
    %168 = vector.broadcast %167 : vector<16x1xf32> to vector<16x128xf32>
    %169 = arith.select %164, %166, %168 : vector<16x128xi1>, vector<16x128xf32>
    %cst_84 = arith.constant dense<0.000000e+00> : vector<16x128xf32>
    %170 = tpu.matmul %5, %1, %cst_84 {dimension_numbers = #tpu.dot_dimension_numbers<[1], [0], [0], [1], [0, 0, 1, 1], [], []>} : vector<16x4xf32>, vector<4x128xf32>, vector<16x128xf32> -> vector<16x128xf32>
    %171 = vector.broadcast %11 : vector<16x1xf32> to vector<16x128xf32>
    %172 = arith.addf %170, %171 : vector<16x128xf32>
    %173 = arith.mulf %106, %169 : vector<16x128xf32>
    %174 = arith.addf %173, %172 : vector<16x128xf32>
    %cst_85 = arith.constant 0.000000e+00 : f32
    %175 = vector.broadcast %cst_85 : f32 to vector<16x128xf32>
    %176 = arith.maximumf %174, %175 : vector<16x128xf32>
    %c0_86 = arith.constant 0 : index
    %c0_87 = arith.constant 0 : index
    %177 = vector.load %arg2[%c0_86, %c0_87] : memref<16x128xf32, #tpu.memory_space<vmem>>, vector<16x128xf32>
    tpu.vector_store %arg2[%c0_86, %c0_87], %176 {strides = array<i32>} : memref<16x128xf32, #tpu.memory_space<vmem>>, vector<16x128xf32>,
    return
  }
}

</mosaic_0001>

<bundles_post_ra>
// kernel: residual_block.1
= control target key start
LH: loop header
LB: loop body
LE: loop exit
PB: predicated region body
PF: predicated region fallthrough
CT: control target
= control target key end

     0   :  { %vm35_vm0 = vcmask 523264   ;;  %v1428_v18 = vmov 70   ;;  %v1429_v33 = vmov 71   ;;  %s1430_s29 = smov 1   ;;  %v1431_v40 = vmov 0.0   ;;  %s1432_s30 = smov 14   ;;  %s1605_s0 = inlined_call_operand.vmem [shape: f32[80,128], index: 0, kind: input, shape index: {}]   ;;  %s1606_s1 = inlined_call_operand.vmem [shape: f32[16,384], index: 1, kind: input, shape index: {}]   ;;  %s1607_s2 = inlined_call_operand.vmem [shape: f32[16,128], index: 2, kind: output, shape index: {}]  }
   0x1   :  { %v11_v0 = vld [vmem:[%s1605_s0] sm:$0xff]  ;;  %v12_v1 = vld [vmem:[%s1605_s0 + $0x8] sm:$0xff]  ;;  %v13_v2 = vld [vmem:[%s1605_s0 + $0x10] sm:$0xff]  ;;  %1249 = vset.pattern.permute.xlu1 %v1428_v18  ;;  %1250 = vset.pattern.permute.xlu0 %v1429_v33  ;;  %181 = vst [vmem:[#allocation2] sm:$0xff] %v1431_v40  ;;  %v27_v45 = vlaneseq  ;;  %vm193_vm2 = vcmask 1047664   ;;  %vm195_vm3 = vcmask 113664  }
   0x2   :  { %v1169_v3 = vpack.c.bf16 %v12_v1, %v11_v0  ;;  %v14_v4 = vld [vmem:[%s1605_s0 + $0x18] sm:$0xff]  ;;  %v15_v6 = vld [vmem:[%s1605_s0 + $0x20] sm:$0xff]  ;;  %v16_v7 = vld [vmem:[%s1605_s0 + $0x28] sm:$0xff]  ;;  %182 = vst [vmem:[#allocation2 + $0x8] sm:$0xff] %v1431_v40  ;;  %s1433_s3 = smov 112   ;;  %s1434_s4 = smov 110  }
   0x3   :  { %v1173_v5 = vpack.c.bf16 %v14_v4, %v13_v2  ;;  %v1493_v8 = vld [vmem:[%s1606_s1 + $0x10] sm:$0xff]  ;;  %v1177_v9 = vpack.c.bf16 %v16_v7, %v15_v6  ;;  %v18_v11 = vld [vmem:[%s1605_s0 + $0x38] sm:$0xff]  ;;  %v1506_v13 = vld [vmem:[%s1606_s1 + $0x28] sm:$0xff]  ;;  %183 = vst [vmem:[#allocation2 + $0x10] sm:$0xff] %v1431_v40  ;;  %v1520_v47 = vand.u32 127, %v27_v45  ;;  %s1435_s5 = smov 126  }
   0x4   :  { %1170 = vmatprep.subr.bf16.mxu0 %v1169_v3  ;;  %1149 = vmatprep.mubr.msk.f32.mxu0 %vm35_vm0, %v1493_v8  ;;  %v17_v10 = vld [vmem:[%s1605_s0 + $0x30] sm:$0xff]  ;;  %184 = vst [vmem:[#allocation2 + $0x18] sm:$0xff] %v1431_v40  ;;  %s1436_s6 = smov 108   ;;  %s1437_s7 = smov 124   ;;  %vm380_vm4 = vcmask 916480   ;;  %vm403_vm5 = vcmask 900096  }
   0x5   :  { %1172 = vmatpush3.bf16.msra.mxu0 %v1169_v3  ;;  %v1181_v12 = vpack.c.bf16 %v18_v11, %v17_v10  ;;  %vm29_vm1 = vcmp.lt.s32.totalorder %v1520_v47, 62  ;;  %s1438_s8 = smov 106   ;;  %s1439_s9 = smov 122   ;;  %vm219_vm6 = vcmask 1031168   ;;  %vm426_vm7 = vcmask 883712  }
   0x6   :  { %1174 = vmatprep.subr.bf16.mxu0 %v1173_v5  ;;  %v1061_v52 = vsel %vm29_vm1, 1.0, %v1431_v40  ;;  %s1440_s10 = smov 104   ;;  %s1441_s11 = smov 120   ;;  %vm242_vm8 = vcmask 1014784   ;;  %vm449_vm9 = vcmask 867328   ;;  %vm265_vm10 = vcmask 998400  }
   0x7   :  { %s1442_s12 = smov 102   ;;  %s1443_s13 = smov 118   ;;  %vm472_vm11 = vcmask 850944   ;;  %vm288_vm12 = vcmask 982016   ;;  %vm495_vm13 = vcmask 834560   ;;  %vm311_vm14 = vcmask 965632  }
   0x8   :  { %s1444_s14 = smov 100   ;;  %s1445_s15 = smov 116   ;;  %vm518_vm15 = vcmask 818176   ;;  %vm541_vm1 = vcmask 801792  }
   0x9   :  { %1176 = vmatpush3.bf16.msra.mxu0 %v1173_v5  ;;  %s1446_s16 = smov 98   ;;  %v22_v5 = vld [vmem:[%s1606_s1 + $0x8] sm:$0xff]  ;;  %s1447_s19 = smov 114  }
   0xa   :  { %1178 = vmatprep.subr.bf16.mxu0 %v1177_v9  ;;  %644 = vmatprep.mubr.f32.mxu1 %v22_v5  ;;  %s1453_s28 = smov 64  }
   0xd   :  { %1180 = vmatpush3.bf16.msra.mxu0 %v1177_v9 }
   0xe   :  { %1182 = vmatprep.subr.bf16.mxu0 %v1181_v12 }
  0x11   :  { %1184 = vmatpush3.bf16.msra.mxu0 %v1181_v12 }
  0x14   :  { %1150 = vmatmul.mubr.msk.f32.vlgmr.msra.gmra.mrb[0].mxu0 %vm35_vm0, %v1506_v13  ;;  %vm334_vm0 = vcmask 949248  }
  0xe7   :  { %v1151_v14 = vpop.f32.mrb[0].mxu0 }
  0xe8   :  { %v108_v15 = vpop.f32.mrb[1].mxu0  ;;  %v124_v17 = vmul.f32 %v1151_v14, %v1151_v14 }
  0xe9   :  { %117 = vadd.xlane.f32.xlu0 %v108_v15  ;;  %v123_v16 = vmul.f32 %v108_v15, %v108_v15 }
  0xeb   :  { %125 = vadd.xlane.f32.xlu1 %v123_v16 }
  0xed   :  { %119 = vadd.xlane.f32.xlu0 %v1151_v14 }
  0xef   :  { %127 = vadd.xlane.f32.xlu1 %v124_v17 }
 0x176   :  { %v118_v19 = vpop.xlane.xlu0 %117 }
 0x177   :  { %v121_v20 = vmul.f32 0.016129032, %v118_v19 }
 0x178   :  { %v126_v21 = vpop.xlane.xlu1 %125 }
 0x179   :  { %v131_v22 = vmul.f32 %v121_v20, %v121_v20  ;;  %v129_v23 = vmul.f32 0.016129032, %v126_v21 }
 0x17a   :  { %v120_v24 = vpop.xlane.xlu0 %119 }
 0x17b   :  { %v133_v25 = vsub.f32 %v129_v23, %v131_v22  ;;  %v122_v26 = vmul.f32 0.016129032, %v120_v24 }
 0x17c   :  { %v128_v27 = vpop.xlane.xlu1 %127 }
 0x17d   :  { %v135_v28 = vadd.f32 1e-05, %v133_v25  ;;  %v132_v29 = vmul.f32 %v122_v26, %v122_v26  ;;  %v130_v30 = vmul.f32 0.016129032, %v128_v27 }
 0x17f   :  { %1412 = vrsqrt.f32 %v135_v28  ;;  %v134_v31 = vsub.f32 %v130_v30, %v132_v29 }
 0x181   :  { %v136_v32 = vadd.f32 1e-05, %v134_v31 }
 0x183   :  { %1414 = vrsqrt.f32 %v136_v32 }
 0x189   :  { %v1413_v34 = vpop.eup %1412 }
 0x18a   :  { %v139_v35 = vmul.f32 %v1413_v34, %v1493_v8 }
 0x18c   :  { %v141_v36 = vmul.f32 %v139_v35, %v121_v20 }
 0x18d   :  { %v1415_v37 = vpop.eup %1414 }
 0x18e   :  { %145 = vrot.lane.b32.xlu0 %v141_v36, %s1430_s29  ;;  %v140_v38 = vmul.f32 %v1415_v37, %v1506_v13 }
 0x190   :  { %v142_v39 = vmul.f32 %v140_v38, %v122_v26 }
 0x192   :  { %147 = vrot.lane.b32.xlu1 %v142_v39, %s1430_s29 }
 0x196   :  { %155 = vperm.xlu1 %1249, %v139_v35  }
 0x19a   :  { %160 = vperm.xlu1 %1249, %v140_v38  }
 0x19e   :  { %1251 = vset.pattern.permute.xlu1 %v1429_v33 }
 0x200   :  { %v146_v41 = vpop.permute.xlu0 %145 }
 0x201   :  { %v151_v42 = vsub.f32 %v1493_v8, %v146_v41 }
 0x203   :  { %167 = vperm.xlu0 %1250, %v151_v42  }
 0x204   :  { %v148_v43 = vpop.permute.xlu1 %147 }
 0x205   :  { %v152_v44 = vsub.f32 %v1506_v13, %v148_v43 }
 0x207   :  { %172 = vperm.xlu1 %1251, %v152_v44  }
 0x215   :  { %v156_v46 = vpop.permute.xlu1 %155 }
 0x216   :  { %v163_v48 = vmul.f32 %v156_v46, %v108_v15 }
 0x219   :  { %v161_v49 = vpop.permute.xlu1 %160 }
 0x21a   :  { %v164_v53 = vmul.f32 %v1151_v14, %v161_v49 }
 0x282   :  { %v168_v50 = vpop.permute.xlu0 %167 }
 0x283   :  { %v175_v51 = vadd.f32 %v168_v50, %v163_v48 }
 0x285   :  { %v177_v54 = vmax.f32 %v175_v51, 0.0 }
 0x286   :  { %v173_v55 = vpop.permute.xlu1 %172 }
 0x287   :  { %v179_v56 = vmul.f32 %v1061_v52, %v177_v54  ;;  %v176_v57 = vadd.f32 %v173_v55, %v164_v53 }
 0x289   :  { %v178_v58 = vmax.f32 %v176_v57, 0.0  ;;  %187 = vrot.lane.b32.xlu1 %v179_v56, %s1432_s30 }
 0x28b   :  { %v180_v59 = vmul.f32 %v1061_v52, %v178_v58 }
 0x28d   :  { %189 = vrot.lane.b32.xlu0 %v180_v59, %s1432_s30 }
 0x2fb   :  { %v188_v60 = vpop.permute.xlu1 %187 }
 0x2fc   :  { %194 = vst.msk [vmem:[#allocation2] sm:$0xff] %vm193_vm2, %v188_v60 }
 0x2fd   :  { %196 = vst.msk [vmem:[#allocation2 + $0x8] sm:$0xff] %vm195_vm3, %v188_v60 }
 0x2ff   :  { %v190_v61 = vpop.permute.xlu0 %189 }
 0x300   :  { %197 = vst.msk [vmem:[#allocation2 + $0x10] sm:$0xff] %vm193_vm2, %v190_v61  ;;  %vm357_vm2 = vcmask 932864  }
 0x301   :  { %198 = vst.msk [vmem:[#allocation2 + $0x18] sm:$0xff] %vm195_vm3, %v190_v61  ;;  %vm32_vm3 = vcmp.lt.s32.totalorder %v1520_v47, 60 }
 0x303   :  { %v1524_v62 = vld [vmem:[#allocation2] sm:$0xff] }
 0x304   :  { %v365_v63 = vld [vmem:[#allocation2 + $0x8] sm:$0xff] }
 0x305   :  { %v1322_v0 = vpack.i.bf16 %v365_v63, %v1524_v62 }
 0x307   :  { %1323 = vrot.lane.b32.xlu1 %v1322_v0, %s1433_s3  ;;  %v1527_v1 = vld [vmem:[#allocation2 + $0x10] sm:$0xff] }
 0x308   :  { %v367_v2 = vld [vmem:[#allocation2 + $0x18] sm:$0xff]  ;;  %v1187_v4 = vpack.c.bf16 %v1527_v1, %v1524_v62 }
 0x309   :  { %v1252_v3 = vpack.i.bf16 %v367_v2, %v1527_v1 }
 0x30b   :  { %1253 = vrot.lane.b32.xlu0 %v1252_v3, %s1433_s3  ;;  %1328 = vrot.lane.b32.xlu1 %v1322_v0, %s1434_s4 }
 0x30f   :  { %1258 = vrot.lane.b32.xlu0 %v1252_v3, %s1434_s4  ;;  %1333 = vrot.lane.b32.xlu1 %v1322_v0, %s1435_s5 }
 0x313   :  { %1263 = vrot.lane.b32.xlu0 %v1252_v3, %s1435_s5  ;;  %1338 = vrot.lane.b32.xlu1 %v1322_v0, %s1436_s6 }
 0x317   :  { %1268 = vrot.lane.b32.xlu0 %v1252_v3, %s1436_s6  ;;  %1343 = vrot.lane.b32.xlu1 %v1322_v0, %s1437_s7 }
 0x31b   :  { %1273 = vrot.lane.b32.xlu0 %v1252_v3, %s1437_s7  ;;  %1348 = vrot.lane.b32.xlu1 %v1322_v0, %s1438_s8 }
 0x31f   :  { %1278 = vrot.lane.b32.xlu0 %v1252_v3, %s1438_s8  ;;  %1353 = vrot.lane.b32.xlu1 %v1322_v0, %s1439_s9 }
 0x323   :  { %1283 = vrot.lane.b32.xlu0 %v1252_v3, %s1439_s9  ;;  %1358 = vrot.lane.b32.xlu1 %v1322_v0, %s1440_s10 }
 0x327   :  { %1288 = vrot.lane.b32.xlu0 %v1252_v3, %s1440_s10  ;;  %1363 = vrot.lane.b32.xlu1 %v1322_v0, %s1441_s11 }
 0x32b   :  { %1293 = vrot.lane.b32.xlu0 %v1252_v3, %s1441_s11  ;;  %1368 = vrot.lane.b32.xlu1 %v1322_v0, %s1442_s12 }
 0x32f   :  { %1298 = vrot.lane.b32.xlu0 %v1252_v3, %s1442_s12  ;;  %1373 = vrot.lane.b32.xlu1 %v1322_v0, %s1443_s13 }
 0x333   :  { %1303 = vrot.lane.b32.xlu0 %v1252_v3, %s1443_s13  ;;  %1378 = vrot.lane.b32.xlu1 %v1322_v0, %s1444_s14 }
 0x337   :  { %1308 = vrot.lane.b32.xlu0 %v1252_v3, %s1444_s14  ;;  %1383 = vrot.lane.b32.xlu1 %v1322_v0, %s1445_s15 }
 0x33b   :  { %1313 = vrot.lane.b32.xlu0 %v1252_v3, %s1445_s15  ;;  %1388 = vrot.lane.b32.xlu1 %v1322_v0, %s1446_s16 }
 0x33f   :  { %1318 = vrot.lane.b32.xlu0 %v1252_v3, %s1446_s16  ;;  %1393 = vrot.lane.b32.xlu1 %v1322_v0, %s1447_s19 }
 0x343   :  { %1398 = vrot.lane.b32.xlu0 %v1252_v3, %s1447_s19 }
 0x379   :  { %v1324_v6 = vpop.permute.xlu1 %1323 }
 0x37a   :  { %v1326_v7 = vunpack.i.h.bf16 %v1324_v6  ;;  %v1325_v9 = vunpack.i.l.bf16 %v1324_v6 }
 0x37c   :  { %v381_v17 = vsel %vm380_vm4, %v1325_v9, %v1326_v7 }
 0x37d   :  { %v1254_v10 = vpop.permute.xlu0 %1253  ;;  %v1329_v11 = vpop.permute.xlu1 %1328 }
 0x37e   :  { %v1256_v12 = vunpack.i.h.bf16 %v1254_v10  ;;  %v1255_v14 = vunpack.i.l.bf16 %v1254_v10  ;;  %v1331_v15 = vunpack.i.h.bf16 %v1329_v11  ;;  %v1330_v16 = vunpack.i.l.bf16 %v1329_v11 }
 0x380   :  { %v382_v18 = vsel %vm380_vm4, %v1255_v14, %v1256_v12  ;;  %v404_v26 = vsel %vm403_vm5, %v1330_v16, %v1331_v15 }
 0x381   :  { %v1259_v19 = vpop.permute.xlu0 %1258  ;;  %v1334_v20 = vpop.permute.xlu1 %1333  ;;  %v1185_v21 = vpack.c.bf16 %v382_v18, %v381_v17 }
 0x382   :  { %v1261_v22 = vunpack.i.h.bf16 %v1259_v19  ;;  %v1260_v23 = vunpack.i.l.bf16 %v1259_v19  ;;  %v1336_v24 = vunpack.i.h.bf16 %v1334_v20  ;;  %v1335_v25 = vunpack.i.l.bf16 %v1334_v20 }
 0x383   :  { %1186 = vmatprep.subr.bf16.mxu1 %v1185_v21 }
 0x384   :  { %1188 = vmatpush3.bf16.msra.mxu1 %v1187_v4  ;;  %v405_v27 = vsel %vm403_vm5, %v1260_v23, %v1261_v22  ;;  %v220_v35 = vsel %vm219_vm6, %v1335_v25, %v1336_v24 }
 0x385   :  { %v1264_v28 = vpop.permute.xlu0 %1263  ;;  %v1339_v29 = vpop.permute.xlu1 %1338  ;;  %v1189_v30 = vpack.c.bf16 %v405_v27, %v404_v26 }
 0x386   :  { %v1266_v31 = vunpack.i.h.bf16 %v1264_v28  ;;  %v1265_v32 = vunpack.i.l.bf16 %v1264_v28  ;;  %v1341_v33 = vunpack.i.h.bf16 %v1339_v29  ;;  %v1340_v34 = vunpack.i.l.bf16 %v1339_v29 }
 0x387   :  { %1190 = vmatprep.subr.bf16.mxu1 %v1189_v30 }
 0x388   :  { %v221_v36 = vsel %vm219_vm6, %v1265_v32, %v1266_v31  ;;  %v427_v45 = vsel %vm426_vm7, %v1340_v34, %v1341_v33 }
 0x389   :  { %v1269_v37 = vpop.permute.xlu0 %1268  ;;  %v1344_v38 = vpop.permute.xlu1 %1343  ;;  %v1191_v39 = vpack.c.bf16 %v221_v36, %v220_v35 }
 0x38a   :  { %v1271_v41 = vunpack.i.h.bf16 %v1269_v37  ;;  %v1270_v42 = vunpack.i.l.bf16 %v1269_v37  ;;  %v1346_v43 = vunpack.i.h.bf16 %v1344_v38  ;;  %v1345_v44 = vunpack.i.l.bf16 %v1344_v38 }
 0x38b   :  { %1192 = vmatpush3.bf16.msra.mxu1 %v1191_v39 }
 0x38c   :  { %v428_v46 = vsel %vm426_vm7, %v1270_v42, %v1271_v41  ;;  %v243_v55 = vsel %vm242_vm8, %v1345_v44, %v1346_v43 }
 0x38d   :  { %v1274_v48 = vpop.permute.xlu0 %1273  ;;  %v1349_v49 = vpop.permute.xlu1 %1348  ;;  %v1193_v50 = vpack.c.bf16 %v428_v46, %v427_v45 }
 0x38e   :  { %v1276_v51 = vunpack.i.h.bf16 %v1274_v48  ;;  %v1275_v52 = vunpack.i.l.bf16 %v1274_v48  ;;  %v1351_v53 = vunpack.i.h.bf16 %v1349_v49  ;;  %v1350_v54 = vunpack.i.l.bf16 %v1349_v49 }
 0x38f   :  { %1194 = vmatprep.subr.bf16.mxu1 %v1193_v50 }
 0x390   :  { %v244_v56 = vsel %vm242_vm8, %v1275_v52, %v1276_v51  ;;  %v450_v0 = vsel %vm449_vm9, %v1350_v54, %v1351_v53  ;;  %vm1451_vm8 = vmmov 0  }
 0x391   :  { %v1279_v57 = vpop.permute.xlu0 %1278  ;;  %v1354_v58 = vpop.permute.xlu1 %1353  ;;  %v1195_v59 = vpack.c.bf16 %v244_v56, %v243_v55  ;;  %1156 = vmatprep.mubr.msk.f32.mxu0 %vm1451_vm8, %v1431_v40 }
 0x392   :  { %v1281_v60 = vunpack.i.h.bf16 %v1279_v57  ;;  %v1280_v61 = vunpack.i.l.bf16 %v1279_v57  ;;  %v1356_v62 = vunpack.i.h.bf16 %v1354_v58  ;;  %v1355_v63 = vunpack.i.l.bf16 %v1354_v58 }
 0x393   :  { %1196 = vmatpush3.bf16.msra.mxu1 %v1195_v59 }
 0x394   :  { %v451_v1 = vsel %vm449_vm9, %v1280_v61, %v1281_v60  ;;  %v266_v10 = vsel %vm265_vm10, %v1355_v63, %v1356_v62  ;;  %vm753_vm9 = vcmask 7168  }
 0x395   :  { %v1284_v2 = vpop.permute.xlu0 %1283  ;;  %v1359_v3 = vpop.permute.xlu1 %1358  ;;  %v1197_v4 = vpack.c.bf16 %v451_v1, %v450_v0 }
 0x396   :  { %v1286_v5 = vunpack.i.h.bf16 %v1284_v2  ;;  %v1285_v6 = vunpack.i.l.bf16 %v1284_v2  ;;  %v1361_v7 = vunpack.i.h.bf16 %v1359_v3  ;;  %v1360_v9 = vunpack.i.l.bf16 %v1359_v3 }
 0x397   :  { %1198 = vmatprep.subr.bf16.mxu1 %v1197_v4 }
 0x398   :  { %v267_v11 = vsel %vm265_vm10, %v1285_v6, %v1286_v5  ;;  %v473_v20 = vsel %vm472_vm11, %v1360_v9, %v1361_v7  ;;  %vm756_vm10 = vcmask 130048  }
 0x399   :  { %v1289_v12 = vpop.permute.xlu0 %1288  ;;  %v1364_v14 = vpop.permute.xlu1 %1363  ;;  %v1199_v15 = vpack.c.bf16 %v267_v11, %v266_v10 }
 0x39a   :  { %v1291_v16 = vunpack.i.h.bf16 %v1289_v12  ;;  %v1290_v17 = vunpack.i.l.bf16 %v1289_v12  ;;  %v1366_v18 = vunpack.i.h.bf16 %v1364_v14  ;;  %v1365_v19 = vunpack.i.l.bf16 %v1364_v14 }
 0x39b   :  { %1200 = vmatpush3.bf16.msra.mxu1 %v1199_v15 }
 0x39c   :  { %v474_v21 = vsel %vm472_vm11, %v1290_v17, %v1291_v16  ;;  %v289_v29 = vsel %vm288_vm12, %v1365_v19, %v1366_v18  ;;  %vm835_vm11 = vcmask 15360  }
 0x39d   :  { %v1294_v22 = vpop.permute.xlu0 %1293  ;;  %v1369_v23 = vpop.permute.xlu1 %1368  ;;  %v1201_v24 = vpack.c.bf16 %v474_v21, %v473_v20 }
 0x39e   :  { %v1296_v25 = vunpack.i.h.bf16 %v1294_v22  ;;  %v1295_v26 = vunpack.i.l.bf16 %v1294_v22  ;;  %v1371_v27 = vunpack.i.h.bf16 %v1369_v23  ;;  %v1370_v28 = vunpack.i.l.bf16 %v1369_v23  ;;  %v21_v23 = vld [vmem:[%s1606_s1] sm:$0xff] }
 0x39f   :  { %1202 = vmatprep.subr.bf16.mxu1 %v1201_v24  ;;  %v24_v24 = vld [vmem:[%s1606_s1 + $0x20] sm:$0xff] }
 0x3a0   :  { %v290_v30 = vsel %vm288_vm12, %v1295_v26, %v1296_v25  ;;  %v496_v38 = vsel %vm495_vm13, %v1370_v28, %v1371_v27  ;;  %v23_v25 = vld [vmem:[%s1606_s1 + $0x18] sm:$0xff]  ;;  %v1062_v27 = vsel %vm32_vm3, 1.0, %v1431_v40  ;;  %s1452_s1 = smov 60   ;;  %vm840_vm12 = vcmask 1041408  }
 0x3a1   :  { %v1299_v31 = vpop.permute.xlu0 %1298  ;;  %v1374_v32 = vpop.permute.xlu1 %1373  ;;  %v1203_v33 = vpack.c.bf16 %v290_v30, %v289_v29 }
 0x3a2   :  { %v1301_v34 = vunpack.i.h.bf16 %v1299_v31  ;;  %v1300_v35 = vunpack.i.l.bf16 %v1299_v31  ;;  %v1376_v36 = vunpack.i.h.bf16 %v1374_v32  ;;  %v1375_v37 = vunpack.i.l.bf16 %v1374_v32 }
 0x3a3   :  { %1204 = vmatpush3.bf16.msra.mxu1 %v1203_v33 }
 0x3a4   :  { %v497_v39 = vsel %vm495_vm13, %v1300_v35, %v1301_v34  ;;  %v312_v49 = vsel %vm311_vm14, %v1375_v37, %v1376_v36  ;;  %v1448_v37 = vmov 72   ;;  %vm970_vm13 = vcmask 1043456  }
 0x3a5   :  { %v1304_v41 = vpop.permute.xlu0 %1303  ;;  %v1379_v42 = vpop.permute.xlu1 %1378  ;;  %v1205_v43 = vpack.c.bf16 %v497_v39, %v496_v38  ;;  %1402 = vset.pattern.permute.xlu1 %v1448_v37 }
 0x3a6   :  { %v1306_v44 = vunpack.i.h.bf16 %v1304_v41  ;;  %v1305_v45 = vunpack.i.l.bf16 %v1304_v41  ;;  %v1381_v46 = vunpack.i.h.bf16 %v1379_v42  ;;  %v1380_v48 = vunpack.i.l.bf16 %v1379_v42 }
 0x3a7   :  { %1206 = vmatprep.subr.bf16.mxu1 %v1205_v43 }
 0x3a8   :  { %v313_v50 = vsel %vm311_vm14, %v1305_v45, %v1306_v44  ;;  %v519_v58 = vsel %vm518_vm15, %v1380_v48, %v1381_v46  ;;  %vm965_vm14 = vcmask 31744  }
 0x3a9   :  { %v1309_v51 = vpop.permute.xlu0 %1308  ;;  %v1384_v52 = vpop.permute.xlu1 %1383  ;;  %v1207_v53 = vpack.c.bf16 %v313_v50, %v312_v49 }
 0x3aa   :  { %v1311_v54 = vunpack.i.h.bf16 %v1309_v51  ;;  %v1310_v55 = vunpack.i.l.bf16 %v1309_v51  ;;  %v1386_v56 = vunpack.i.h.bf16 %v1384_v52  ;;  %v1385_v57 = vunpack.i.l.bf16 %v1384_v52 }
 0x3ab   :  { %1208 = vmatpush3.bf16.msra.mxu1 %v1207_v53  ;;  %v1449_v52 = vmov 73  }
 0x3ac   :  { %v520_v59 = vsel %vm518_vm15, %v1310_v55, %v1311_v54  ;;  %v335_v3 = vsel %vm334_vm0, %v1385_v57, %v1386_v56  ;;  %1404 = vset.pattern.permute.xlu0 %v1449_v52 }
 0x3ad   :  { %v1314_v60 = vpop.permute.xlu0 %1313  ;;  %v1389_v61 = vpop.permute.xlu1 %1388  ;;  %v1209_v62 = vpack.c.bf16 %v520_v59, %v519_v58 }
 0x3ae   :  { %v1316_v63 = vunpack.i.h.bf16 %v1314_v60  ;;  %v1315_v0 = vunpack.i.l.bf16 %v1314_v60  ;;  %v1391_v1 = vunpack.i.h.bf16 %v1389_v61  ;;  %v1390_v2 = vunpack.i.l.bf16 %v1389_v61 }
 0x3af   :  { %1210 = vmatprep.subr.bf16.mxu1 %v1209_v62 }
 0x3b0   :  { %v336_v4 = vsel %vm334_vm0, %v1315_v0, %v1316_v63  ;;  %v542_v14 = vsel %vm541_vm1, %v1390_v2, %v1391_v1  ;;  %v721_v2 = vand.u32 1, %v1520_v47 }
 0x3b1   :  { %v1319_v5 = vpop.permute.xlu0 %1318  ;;  %v1394_v6 = vpop.permute.xlu1 %1393  ;;  %v1211_v7 = vpack.c.bf16 %v336_v4, %v335_v3 }
 0x3b2   :  { %v1321_v9 = vunpack.i.h.bf16 %v1319_v5  ;;  %v1320_v10 = vunpack.i.l.bf16 %v1319_v5  ;;  %v1396_v11 = vunpack.i.h.bf16 %v1394_v6  ;;  %v1395_v12 = vunpack.i.l.bf16 %v1394_v6 }
 0x3b3   :  { %1212 = vmatpush3.bf16.msra.mxu1 %v1211_v7  ;;  %vm1558_vm4 = vcmp.eq.s32.totalorder %v721_v2, 0  ;;  %vm733_vm6 = vcmp.eq.s32.totalorder %v721_v2, 1 }
 0x3b4   :  { %v543_v15 = vsel %vm541_vm1, %v1320_v10, %v1321_v9  ;;  %v358_v20 = vsel %vm357_vm2, %v1395_v12, %v1396_v11  ;;  %vm730_vm5 = vmand %vm1558_vm4, %vm32_vm3 }
 0x3b5   :  { %v1399_v16 = vpop.permute.xlu0 %1398  ;;  %v1213_v17 = vpack.c.bf16 %v543_v15, %v542_v14  ;;  %v1065_v7 = vsel %vm730_vm5, 1.0, %v1431_v40  ;;  %vm734_vm7 = vmand %vm733_vm6, %vm32_vm3 }
 0x3b6   :  { %v1401_v18 = vunpack.i.h.bf16 %v1399_v16  ;;  %v1400_v19 = vunpack.i.l.bf16 %v1399_v16  ;;  %v1066_v15 = vsel %vm734_vm7, 1.0, %v1431_v40  ;;  %v20_v40 = vld [vmem:[%s1605_s0 + $0x48] sm:$0x3] }
 0x3b7   :  { %1214 = vmatprep.subr.bf16.mxu1 %v1213_v17 }
 0x3b8   :  { %v359_v21 = vsel %vm357_vm2, %v1400_v19, %v1401_v18  ;;  %v1450_v19 = vmov 0.0|0.0  }
 0x3b9   :  { %v1215_v22 = vpack.c.bf16 %v359_v21, %v358_v20  ;;  %1217 = vmatprep.subr.bf16.mxu0 %v1450_v19 }
 0x3bb   :  { %1216 = vmatpush3.bf16.msra.mxu1 %v1215_v22 }
 0x3be   :  { %645 = vmatmul.mubr.f32.vlgmr.msra.gmra.mrb[0].mxu1 %v21_v23 }
 0x3bf   :  { %649 = vmatprep.mubr.f32.mxu1 %v24_v24 }
 0x3c2   :  { %650 = vmatmul.mubr.f32.gmra.mrb[2].mxu1 %v23_v25 }
 0x491   :  { %v1118_v26 = vpop.f32.mrb[0].mxu1 }
 0x492   :  { %v1119_v28 = vpop.f32.mrb[1].mxu1 }
 0x493   :  { %v1120_v29 = vadd.f32 %v1119_v28, %v1118_v26 }
 0x495   :  { %v655_v30 = vmul.f32 %v1120_v29, %v1062_v27  ;;  %v1121_v31 = vpop.f32.mrb[2].mxu1 }
 0x496   :  { %v1122_v32 = vpop.f32.mrb[3].mxu1 }
 0x497   :  { %v1123_v33 = vadd.f32 %v1122_v32, %v1121_v31  ;;  %657 = vadd.xlane.f32.xlu1 %v655_v30  ;;  %v663_v34 = vmul.f32 %v655_v30, %v655_v30 }
 0x499   :  { %v656_v35 = vmul.f32 %v1123_v33, %v1062_v27  ;;  %665 = vadd.xlane.f32.xlu0 %v663_v34 }
 0x49b   :  { %v664_v36 = vmul.f32 %v656_v35, %v656_v35 }
 0x49d   :  { %659 = vadd.xlane.f32.xlu0 %v656_v35 }
 0x4a1   :  { %667 = vadd.xlane.f32.xlu0 %v664_v36  ;;  %v19_v36 = vld [vmem:[%s1605_s0 + $0x40] sm:$0xf] }
 0x524   :  { %v658_v38 = vpop.xlane.xlu1 %657 }
 0x525   :  { %v661_v39 = vmul.f32 0.016666668, %v658_v38  ;;  %v1454_v38 = vmov 0  }
 0x526   :  { %v666_v41 = vpop.xlane.xlu0 %665 }
 0x527   :  { %v671_v42 = vmul.f32 %v661_v39, %v661_v39  ;;  %v669_v43 = vmul.f32 0.016666668, %v666_v41 }
 0x529   :  { %v673_v44 = vsub.f32 %v669_v43, %v671_v42 }
 0x52a   :  { %v660_v45 = vpop.xlane.xlu0 %659 }
 0x52b   :  { %v675_v46 = vadd.f32 1e-05, %v673_v44  ;;  %v662_v48 = vmul.f32 0.016666668, %v660_v45 }
 0x52d   :  { %1416 = vrsqrt.f32 %v675_v46  ;;  %v672_v50 = vmul.f32 %v662_v48, %v662_v48 }
 0x52e   :  { %v668_v49 = vpop.xlane.xlu0 %667 }
 0x52f   :  { %v670_v51 = vmul.f32 0.016666668, %v668_v49 }
 0x531   :  { %v674_v53 = vsub.f32 %v670_v51, %v672_v50 }
 0x533   :  { %v676_v54 = vadd.f32 1e-05, %v674_v53 }
 0x535   :  { %1418 = vrsqrt.f32 %v676_v54  ;;  %v1456_v54 = vmov 1  }
 0x537   :  { %v1417_v55 = vpop.eup %1416 }
 0x538   :  { %v679_v56 = vmul.f32 %v1417_v55, %v1493_v8 }
 0x53a   :  { %v681_v57 = vmul.f32 %v679_v56, %v661_v39 }
 0x53c   :  { %685 = vrot.lane.b32.xlu1 %v681_v57, %s1430_s29 }
 0x53f   :  { %v1419_v58 = vpop.eup %1418 }
 0x540   :  { %695 = vperm.xlu1 %1402, %v679_v56   ;;  %v680_v59 = vmul.f32 %v1419_v58, %v1506_v13 }
 0x542   :  { %v682_v60 = vmul.f32 %v680_v59, %v662_v48 }
 0x544   :  { %700 = vperm.xlu1 %1402, %v680_v59   ;;  %687 = vrot.lane.b32.xlu0 %v682_v60, %s1430_s29 }
 0x548   :  { %1403 = vset.pattern.permute.xlu1 %v1449_v52  ;;  %v1455_v52 = vmov 74  }
 0x5ae   :  { %v686_v61 = vpop.permute.xlu1 %685 }
 0x5af   :  { %v691_v62 = vsub.f32 %v1493_v8, %v686_v61 }
 0x5b1   :  { %707 = vperm.xlu1 %1403, %v691_v62  }
 0x5b5   :  { %1405 = vset.pattern.permute.xlu1 %v1454_v38 }
 0x5b6   :  { %v688_v63 = vpop.permute.xlu0 %687 }
 0x5b7   :  { %v692_v0 = vsub.f32 %v1506_v13, %v688_v63 }
 0x5b9   :  { %712 = vperm.xlu0 %1404, %v692_v0  }
 0x5bd   :  { %1406 = vset.pattern.permute.xlu0 %v1454_v38 }
 0x5bf   :  { %v696_v1 = vpop.permute.xlu1 %695 }
 0x5c0   :  { %v703_v5 = vmul.f32 %v696_v1, %v655_v30 }
 0x5c3   :  { %v701_v4 = vpop.permute.xlu1 %700 }
 0x5c4   :  { %v704_v11 = vmul.f32 %v701_v4, %v656_v35 }
 0x630   :  { %v708_v6 = vpop.permute.xlu1 %707 }
 0x631   :  { %v1567_v9 = vadd.f32 %v708_v6, %v703_v5 }
 0x633   :  { %v737_v10 = vmul.f32 %v1065_v7, %v1567_v9  ;;  %v745_v18 = vmul.f32 %v1066_v15, %v1567_v9 }
 0x635   :  { %739 = vadd.xlane.f32.xlu1 %v737_v10 }
 0x638   :  { %v713_v12 = vpop.permute.xlu0 %712 }
 0x639   :  { %v1572_v14 = vadd.f32 %v713_v12, %v704_v11 }
 0x63b   :  { %v746_v16 = vmul.f32 %v1066_v15, %v1572_v14  ;;  %v738_v17 = vmul.f32 %v1065_v7, %v1572_v14 }
 0x63d   :  { %749 = vadd.xlane.f32.xlu1 %v746_v16  ;;  %741 = vadd.xlane.f32.xlu0 %v738_v17 }
 0x641   :  { %747 = vadd.xlane.f32.xlu0 %v745_v18 }
 0x64e   :  { %833 = vrot.lane.b32.xlu1 %v1506_v13, %s1452_s1 }
 0x652   :  { %961 = vrot.lane.b32.xlu1 %v1493_v8, %s1453_s28 }
 0x656   :  { %963 = vrot.lane.b32.xlu1 %v1506_v13, %s1453_s28 }
 0x657   :  { %831 = vrot.lane.b32.xlu0 %v1493_v8, %s1452_s1 }
 0x6c2   :  { %v740_v47 = vpop.xlane.xlu1 %739 }
 0x6c3   :  { %v743_v25 = vmul.f32 0.033333335, %v740_v47 }
 0x6ca   :  { %v750_v20 = vpop.xlane.xlu1 %749  ;;  %v742_v21 = vpop.xlane.xlu0 %741 }
 0x6cb   :  { %v752_v22 = vmul.f32 0.033333335, %v750_v20  ;;  %v744_v23 = vmul.f32 0.033333335, %v742_v21 }
 0x6cd   :  { %v755_v27 = vsel %vm753_vm9, %v744_v23, %v752_v22 }
 0x6ce   :  { %v748_v24 = vpop.xlane.xlu0 %747  ;;  %v834_v31 = vpop.permute.xlu1 %833 }
 0x6cf   :  { %v751_v26 = vmul.f32 0.033333335, %v748_v24 }
 0x6d1   :  { %v754_v28 = vsel %vm753_vm9, %v743_v25, %v751_v26 }
 0x6d2   :  { %v1218_v29 = vpack.c.bf16 %v755_v27, %v754_v28  ;;  %v832_v30 = vpop.permute.xlu0 %831  ;;  %v962_v33 = vpop.permute.xlu1 %961 }
 0x6d4   :  { %1219 = vmatpush3.bf16.msra.mxu0 %v1218_v29 }
 0x6d6   :  { %v964_v37 = vpop.permute.xlu1 %963 }
 0x6d7   :  { %1157 = vmatmul.mubr.msk.f32.vlgmr.msra.gmra.mrb[2].mxu0 %vm756_vm10, %v20_v40 }
 0x6d8   :  { %1161 = vmatprep.mubr.msk.f32.mxu0 %vm835_vm11, %v832_v30 }
 0x7aa   :  { %v826_v32 = vpop.f32.mrb[2].mxu0 }
 0x7ab   :  { %v830_v34 = vmax.f32 %v826_v32, 0.0  ;;  %v1158_v35 = vpop.f32.mrb[3].mxu0 }
 0x7ad   :  { %1159 = vmatprep.subr.msk.mxu0 %vm840_vm12, %v830_v34 }
 0x7ae   :  { %1160 = vmatpush3.msk.msra.mxu0 %vm840_vm12, %v830_v34 }
 0x7af   :  { %1162 = vmatmul.mubr.msk.f32.vlgmr.msra.gmra.mrb[4].mxu0 %vm835_vm11, %v834_v31  ;;  %1164 = vmatprep.subr.msk.mxu0 %vm970_vm13, %v19_v36 }
 0x7b0   :  { %1165 = vmatpush3.msk.msra.mxu0 %vm970_vm13, %v19_v36  ;;  %1166 = vmatprep.mubr.msk.f32.mxu0 %vm965_vm14, %v962_v33 }
 0x7b3   :  { %1167 = vmatmul.mubr.msk.f32.vlgmr.msra.gmra.mrb[6].mxu0 %vm965_vm14, %v964_v37 }
 0x882   :  { %v1163_v39 = vpop.f32.mrb[4].mxu0 }
 0x883   :  { %v1072_v41 = vmul.f32 -1.442695, %v1163_v39  ;;  %v910_v42 = vpop.f32.mrb[5].mxu0 }
 0x884   :  { %v1071_v43 = vmul.f32 -1.442695, %v910_v42 }
 0x885   :  { %1420 = vpow2.f32 %v1072_v41 }
 0x886   :  { %1422 = vpow2.f32 %v1071_v43  ;;  %v1168_v51 = vpop.f32.mrb[6].mxu0 }
 0x887   :  { %v1040_v53 = vpop.f32.mrb[7].mxu0 }
 0x88f   :  { %v1421_v44 = vpop.eup %1420 }
 0x890   :  { %v1423_v45 = vpop.eup %1422  ;;  %v926_v46 = vadd.f32 1.0, %v1421_v44 }
 0x891   :  { %v925_v48 = vadd.f32 1.0, %v1423_v45 }
 0x892   :  { %1424 = vrcp.f32 %v926_v46 }
 0x893   :  { %1426 = vrcp.f32 %v925_v48 }
 0x89c   :  { %v1425_v49 = vpop.eup %1424 }
 0x89d   :  { %v1427_v50 = vpop.eup %1426  ;;  %940 = vperm.xlu1 %1405, %v1425_v49  }
 0x89e   :  { %935 = vperm.xlu0 %1406, %v1427_v50  }
 0x8a1   :  { %1408 = vset.pattern.permute.xlu1 %v1455_v52 }
 0x8a2   :  { %954 = vperm.xlu1 %1408, %v1493_v8   ;;  %1407 = vset.pattern.permute.xlu0 %v1456_v54 }
 0x8a3   :  { %948 = vperm.xlu0 %1407, %v1425_v49  }
 0x8a6   :  { %1409 = vset.pattern.permute.xlu1 %v1456_v54 }
 0x8a7   :  { %944 = vperm.xlu1 %1409, %v1427_v50   ;;  %1411 = vset.pattern.permute.xlu0 %v1455_v52 }
 0x8ab   :  { %1410 = vset.pattern.permute.xlu1 %v1455_v52 }
 0x8ac   :  { %958 = vperm.xlu1 %1410, %v1506_v13  }
 0x91c   :  { %v941_v55 = vpop.permute.xlu1 %940 }
 0x91d   :  { %v936_v56 = vpop.permute.xlu0 %935 }
 0x921   :  { %v955_v57 = vpop.permute.xlu1 %954 }
 0x922   :  { %v949_v58 = vpop.permute.xlu0 %948  ;;  %v1041_v61 = vadd.f32 %v1040_v53, %v955_v57 }
 0x923   :  { %v952_v62 = vsel %vm1558_vm4, %v941_v55, %v949_v58 }
 0x924   :  { %v1050_v1 = vmul.f32 %v952_v62, %v1572_v14 }
 0x926   :  { %v945_v59 = vpop.permute.xlu1 %944 }
 0x927   :  { %v951_v60 = vsel %vm1558_vm4, %v936_v56, %v945_v59 }
 0x928   :  { %v1049_v8 = vmul.f32 %v951_v60, %v1567_v9 }
 0x92a   :  { %v1051_v63 = vadd.f32 %v1049_v8, %v1041_v61 }
 0x92b   :  { %v959_v0 = vpop.permute.xlu1 %958 }
 0x92c   :  { %v1053_v2 = vmax.f32 %v1051_v63, 0.0  ;;  %v1046_v13 = vadd.f32 %v1168_v51, %v959_v0 }
 0x92e   :  { %v1052_v4 = vadd.f32 %v1050_v1, %v1046_v13  ;;  %1055 = vst [vmem:[%s1607_s2] sm:$0xff] %v1053_v2 }
 0x930   :  { %v1054_v5 = vmax.f32 %v1052_v4, 0.0 }
 0x932   :  { %1056 = vst [vmem:[%s1607_s2 + $0x8] sm:$0xff] %v1054_v5 }

</bundles_post_ra>
